<compile_context>
chip_gen: v7x
topology: tpu7x:2x2x1
jax: 0.10.0
libtpu: 0.0.40
codegen_flags: <defaults>
</compile_context>

<pallas_src>
import jax
import jax.numpy as jnp
from jax.experimental import pallas as pl
from jax.experimental.pallas import tpu as pltpu

LANE = 128                       # lane width: pad head output to a multiple of this
_BATCH_TILE_THRESHOLD = 256      # below this batch size a grid is pure overhead
_TILE_B = 256                    # batch tile when the grid path is used


def _dueling_kernel(x_ref, wfc_ref, bfc_ref, wh_ref, bh_ref, out_ref):
    """Fused fc+ReLU -> single (value|advantage) head matmul, lane-dense output."""
    x = x_ref[...]                                                    # (TB, D_in)
    # fc + ReLU (MXU matmul, f32 accumulation; bias add + ReLU stay f32 on the VPU)
    h = jnp.dot(x, wfc_ref[...], preferred_element_type=jnp.float32) + bfc_ref[...]
    h = jnp.maximum(h, 0.0)                                           # (TB, H) f32
    # Fused head: (TB, H) @ (H, P) + (1, P), P = 128-lane-padded (1 + n_actions).
    out_ref[...] = (
        jnp.dot(h.astype(wh_ref.dtype), wh_ref[...],
                preferred_element_type=jnp.float32)
        + bh_ref[...]
    )


def pack_params(params, operand_dtype=jnp.float32):
    """One-time packing: fuse val/adv heads, zero-pad to lane-dense width,
    optionally cast matmul operands to bf16 (biases stay f32)."""
    n_actions = params["wa"].shape[1]
    n_out = 1 + n_actions
    padded = max(LANE, pl.cdiv(n_out, LANE) * LANE)

    w_head = jnp.concatenate([params["wv"], params["wa"]], axis=1)     # (H, 1+A)
    b_head = jnp.concatenate([params["bv"], params["ba"]], axis=1)     # (1, 1+A)
    w_head = jnp.pad(w_head, ((0, 0), (0, padded - n_out)))            # (H, P)
    b_head = jnp.pad(b_head, ((0, 0), (0, padded - n_out)))            # (1, P)

    return {
        "wfc": params["wfc"].astype(operand_dtype),
        "bfc": params["bfc"].astype(jnp.float32),
        "w_head": w_head.astype(operand_dtype),
        "b_head": b_head.astype(jnp.float32),
        "n_actions": n_actions,          # static python int
        "head_width": padded,            # static python int
    }


def dueling_dqn_forward(state, packed):
    """state: (B, input_dims). packed: output of pack_params.
    Returns (val (B,1), advs (B,n_actions)) — same semantics as the nn.Module."""
    B, d_in = state.shape
    H = packed["wfc"].shape[1]
    P = packed["head_width"]
    n_out = 1 + packed["n_actions"]

    x = state.astype(packed["wfc"].dtype)

    # Batch tiling: grid only when the batch is big enough to amortize it.
    if B >= _BATCH_TILE_THRESHOLD:
        tile_b = _TILE_B
    else:
        tile_b = max(8, ((B + 7) // 8) * 8)          # single sublane-aligned tile
    pad_b = (-B) % tile_b
    if pad_b:
        x = jnp.pad(x, ((0, pad_b), (0, 0)))
    b_padded = B + pad_b
    grid = (b_padded // tile_b,)

    out = pl.pallas_call(
        _dueling_kernel,
        out_shape=jax.ShapeDtypeStruct((b_padded, P), jnp.float32),
        grid_spec=pltpu.PrefetchScalarGridSpec(
            num_scalar_prefetch=0,
            grid=grid,
            in_specs=[
                pl.BlockSpec((tile_b, d_in), lambda i: (i, 0)),   # state tile
                pl.BlockSpec((d_in, H), lambda i: (0, 0)),        # wfc  (resident)
                pl.BlockSpec((1, H), lambda i: (0, 0)),           # bfc  (resident)
                pl.BlockSpec((H, P), lambda i: (0, 0)),           # fused head W
                pl.BlockSpec((1, P), lambda i: (0, 0)),           # fused head b
            ],
            out_specs=pl.BlockSpec((tile_b, P), lambda i: (i, 0)),
        ),
        compiler_params=pltpu.CompilerParams(
            # Batch axis is independent: shards across the 2 TCs on v7x,
            # harmless on single-TC v5e/v6e.
            dimension_semantics=("parallel",),
        ),
    )(x, packed["wfc"], packed["bfc"], packed["w_head"], packed["b_head"])

    out = out[:B]                       # drop batch padding
    val = out[:, :1]                    # (B, 1)
    advs = out[:, 1:n_out]              # (B, n_actions); padded lanes discarded
    return val, advs


def init_params(key, input_dims, hidden_dims, n_actions):
    """Deterministic init mimicking nn.Linear default (uniform +/- 1/sqrt(fan_in)).
    Weights are stored transposed: (in_features, out_features)."""
    k1, k2, k3, k4, k5, k6 = jax.random.split(key, 6)

    def lin(kw, kb, fan_in, fan_out):
        bound = 1.0 / jnp.sqrt(jnp.float32(fan_in))
        w = jax.random.uniform(kw, (fan_in, fan_out), jnp.float32, -bound, bound)
        b = jax.random.uniform(kb, (1, fan_out), jnp.float32, -bound, bound)
        return w, b

    wfc, bfc = lin(k1, k2, input_dims, hidden_dims)
    wv, bv = lin(k3, k4, hidden_dims, 1)
    wa, ba = lin(k5, k6, hidden_dims, n_actions)
    return {"wfc": wfc, "bfc": bfc, "wv": wv, "bv": bv, "wa": wa, "ba": ba}


def reference_forward(state, p):
    h = jnp.maximum(state @ p["wfc"] + p["bfc"], 0.0)
    return h @ p["wv"] + p["bv"], h @ p["wa"] + p["ba"]


# TODO(synk): checkpoint save/load from the PyTorch module is file I/O and is
# intentionally not part of the kernel.

if __name__ == "__main__":
    # Small shapes consistent with the module: input_dims=(16,), hidden_dims=32,
    # n_actions=4, batch=8.
    B, INPUT_DIMS, HIDDEN_DIMS, N_ACTIONS = 8, 16, 32, 4

    key = jax.random.PRNGKey(0)
    k_params, k_state = jax.random.split(key)

    params = init_params(k_params, INPUT_DIMS, HIDDEN_DIMS, N_ACTIONS)
    state = jax.random.normal(k_state, (B, INPUT_DIMS), jnp.float32)

    # f32 operands here so the strict numerical check holds; pass
    # operand_dtype=jnp.bfloat16 for reduced-traffic inference on v6e/v7x.
    packed = pack_params(params, operand_dtype=jnp.float32)

    fwd = jax.jit(lambda s: dueling_dqn_forward(s, packed))
    val, advs = jax.block_until_ready(fwd(state))

    # Sanity check against a pure-JAX reference.
    val_ref, advs_ref = reference_forward(state, params)
    assert val.shape == (B, 1) and advs.shape == (B, N_ACTIONS)
    assert jnp.allclose(val, val_ref, atol=1e-5, rtol=1e-5)
    assert jnp.allclose(advs, advs_ref, atol=1e-5, rtol=1e-5)

    print("KERNEL_OK")
</pallas_src>

<mosaic_0001>
module attributes {stable_mosaic.version = 11 : i64} {
  func.func @_dueling_kernel(%arg0: i32, %arg1: memref<8x16xf32, #tpu.memory_space<vmem>>, %arg2: memref<16x32xf32, #tpu.memory_space<vmem>>, %arg3: memref<1x32xf32, #tpu.memory_space<vmem>>, %arg4: memref<32x128xf32, #tpu.memory_space<vmem>>, %arg5: memref<1x128xf32, #tpu.memory_space<vmem>>, %arg6: memref<8x128xf32, #tpu.memory_space<vmem>>) attributes {dimension_semantics = [#tpu.dimension_semantics<parallel>], iteration_bounds = array<i64: 1>, scalar_prefetch = 0 : i64, scratch_operands = 0 : i64, tpu.core_type = #tpu.core_type<tc>, window_params = [{transform_indices = @transform_0, window_bounds = array<i64: 8, 16>}, {pipeline_mode = #tpu.pipeline_mode<synchronous>, transform_indices = @transform_1, window_bounds = array<i64: 16, 32>}, {pipeline_mode = #tpu.pipeline_mode<synchronous>, transform_indices = @transform_2, window_bounds = array<i64: 1, 32>}, {pipeline_mode = #tpu.pipeline_mode<synchronous>, transform_indices = @transform_3, window_bounds = array<i64: 32, 128>}, {pipeline_mode = #tpu.pipeline_mode<synchronous>, transform_indices = @transform_4, window_bounds = array<i64: 1, 128>}, {transform_indices = @transform_5, window_bounds = array<i64: 8, 128>}]} {
    %c0 = arith.constant 0 : index
    %c0_0 = arith.constant 0 : index
    %0 = vector.load %arg1[%c0, %c0_0] : memref<8x16xf32, #tpu.memory_space<vmem>>, vector<8x16xf32>
    %c0_1 = arith.constant 0 : index
    %c0_2 = arith.constant 0 : index
    %1 = vector.load %arg2[%c0_1, %c0_2] : memref<16x32xf32, #tpu.memory_space<vmem>>, vector<16x32xf32>
    %cst = arith.constant dense<0.000000e+00> : vector<8x32xf32>
    %2 = tpu.matmul %0, %1, %cst {dimension_numbers = #tpu.dot_dimension_numbers<[1], [0], [0], [1], [0, 0, 1, 1], [], []>} : vector<8x16xf32>, vector<16x32xf32>, vector<8x32xf32> -> vector<8x32xf32>
    %c0_3 = arith.constant 0 : index
    %c0_4 = arith.constant 0 : index
    %3 = vector.load %arg3[%c0_3, %c0_4] : memref<1x32xf32, #tpu.memory_space<vmem>>, vector<1x32xf32>
    %4 = vector.broadcast %3 : vector<1x32xf32> to vector<8x32xf32>
    %5 = arith.addf %2, %4 : vector<8x32xf32>
    %cst_5 = arith.constant 0.000000e+00 : f32
    %6 = vector.broadcast %cst_5 : f32 to vector<8x32xf32>
    %7 = arith.maximumf %5, %6 : vector<8x32xf32>
    %c0_6 = arith.constant 0 : index
    %c0_7 = arith.constant 0 : index
    %8 = vector.load %arg4[%c0_6, %c0_7] : memref<32x128xf32, #tpu.memory_space<vmem>>, vector<32x128xf32>
    %cst_8 = arith.constant dense<0.000000e+00> : vector<8x128xf32>
    %9 = tpu.matmul %7, %8, %cst_8 {dimension_numbers = #tpu.dot_dimension_numbers<[1], [0], [0], [1], [0, 0, 1, 1], [], []>} : vector<8x32xf32>, vector<32x128xf32>, vector<8x128xf32> -> vector<8x128xf32>
    %c0_9 = arith.constant 0 : index
    %c0_10 = arith.constant 0 : index
    %10 = vector.load %arg5[%c0_9, %c0_10] : memref<1x128xf32, #tpu.memory_space<vmem>>, vector<1x128xf32>
    %11 = vector.broadcast %10 : vector<1x128xf32> to vector<8x128xf32>
    %12 = arith.addf %9, %11 : vector<8x128xf32>
    %c0_11 = arith.constant 0 : index
    %c0_12 = arith.constant 0 : index
    %13 = vector.load %arg6[%c0_11, %c0_12] : memref<8x128xf32, #tpu.memory_space<vmem>>, vector<8x128xf32>
    tpu.vector_store %arg6[%c0_11, %c0_12], %12 {strides = array<i32>} : memref<8x128xf32, #tpu.memory_space<vmem>>, vector<8x128xf32>,
    return
  }
  func.func @transform_0(%arg0: i32) -> (i32, i32) {
    %c0_i32 = arith.constant 0 : i32
    %c0_i32_0 = arith.constant 0 : i32
    return %arg0, %c0_i32 : i32, i32
  }
  func.func @transform_1(%arg0: i32) -> (i32, i32) {
    %c0_i32 = arith.constant 0 : i32
    %c0_i32_0 = arith.constant 0 : i32
    %c0_i32_1 = arith.constant 0 : i32
    return %c0_i32, %c0_i32_0 : i32, i32
  }
  func.func @transform_2(%arg0: i32) -> (i32, i32) {
    %c0_i32 = arith.constant 0 : i32
    %c0_i32_0 = arith.constant 0 : i32
    %c0_i32_1 = arith.constant 0 : i32
    return %c0_i32, %c0_i32_0 : i32, i32
  }
  func.func @transform_3(%arg0: i32) -> (i32, i32) {
    %c0_i32 = arith.constant 0 : i32
    %c0_i32_0 = arith.constant 0 : i32
    %c0_i32_1 = arith.constant 0 : i32
    return %c0_i32, %c0_i32_0 : i32, i32
  }
  func.func @transform_4(%arg0: i32) -> (i32, i32) {
    %c0_i32 = arith.constant 0 : i32
    %c0_i32_0 = arith.constant 0 : i32
    %c0_i32_1 = arith.constant 0 : i32
    return %c0_i32, %c0_i32_0 : i32, i32
  }
  func.func @transform_5(%arg0: i32) -> (i32, i32) {
    %c0_i32 = arith.constant 0 : i32
    %c0_i32_0 = arith.constant 0 : i32
    return %arg0, %c0_i32 : i32, i32
  }
}

</mosaic_0001>

<bundles_post_ra>
// kernel: _lambda_.1
= control target key start
LH: loop header
LB: loop body
LE: loop exit
PB: predicated region body
PF: predicated region fallthrough
CT: control target
= control target key end

     0   :  { %10 = vsyncpa [#allocation3], 0  ;;  %s442_s0 = inlined_call_operand.hbm [shape: f32[8,16], index: 0, kind: input, shape index: {}]   ;;  %s443_s1 = inlined_call_operand.hbm [shape: f32[16,32], index: 1, kind: input, shape index: {}]   ;;  %s444_s2 = inlined_call_operand.vmem [shape: f32[1,32], index: 2, kind: input, shape index: {}]   ;;  %s445_s3 = inlined_call_operand.hbm [shape: f32[32,128], index: 3, kind: input, shape index: {}]   ;;  %s446_s4 = inlined_call_operand.vmem [shape: f32[1,128], index: 4, kind: input, shape index: {}]   ;;  %s447_s5 = inlined_call_operand.vmem [shape: f32[8,128], index: 5, kind: output, shape index: {}]  }
   0x1   :  { %11 = vsyncpa [#allocation5], 0  ;;  %s353_s18 = smov [#allocation4]   ;;  %s283_s22 = scalar_lea.hbm %s443_s1, 256 }
   0x2   :  { %s27_s19 = sshll.u32 %s353_s18, 4  ;;  %p284_p0 = scmp.ne.s32.totalorder %s443_s1, %s283_s22  ;;  %s28_s19 = int_to_ptr.vmem [resolvable:$true] %s27_s19 }
   0x3   :  { %p287_p1 = scmp.lt.u32.totalorder %s283_s22, %s443_s1 }
   0x5   :  { %p289_p2 = pnand %p287_p1, %p284_p0 }
   0x7   :  { %292 = shalt.err (!%p289_p2)
}
   0x8   :  { %s293_s27 = scalar_lea.vmem %s28_s19, 256  ;;  %p298_p4 = scmp.lt.s32.totalorder %s28_s19, %s28_s19 }
   0x9   :  { %p294_p3 = scmp.ne.s32.totalorder %s28_s19, %s293_s27  ;;  %p299_p5 = scmp.lt.s32.totalorder %s293_s27, %s293_s27 }
   0xb   :  { %p300_p6 = por %p299_p5, %p298_p4 }
   0xd   :  { %p301_p7 = pnand %p300_p6, %p294_p3 }
   0xf   :  { %304 = shalt.err (!%p301_p7)
}
  0x10   :  { %s354_s28 = smov 128   ;;  %s355_s29 = smov 8  }
  0x11   :  { %33 = dma.hbm_to_vmem [thread:$0]  %s443_s1, 256, %s28_s19, [#allocation5], %s354_s28, %s354_s28, %s355_s29  }
  0x12   :  { %s356_s7 = smov [#allocation2]   ;;  %s357_s9 = smov [#allocation6]  }
  0x13   :  { %s18_s8 = sshll.u32 %s356_s7, 4  ;;  %s41_s10 = sshll.u32 %s357_s9, 4  ;;  %s19_s8 = int_to_ptr.vmem [resolvable:$true] %s18_s8  ;;  %s42_s10 = int_to_ptr.vmem [resolvable:$true] %s41_s10 }
  0x14   :  { %s305_s13 = scalar_lea.hbm %s442_s0, 128 }
  0x15   :  { %p306_p8 = scmp.ne.s32.totalorder %s442_s0, %s305_s13  ;;  %p309_p9 = scmp.lt.u32.totalorder %s305_s13, %s442_s0 }
  0x17   :  { %p311_p10 = pnand %p309_p9, %p306_p8 }
  0x19   :  { %314 = shalt.err (!%p311_p10)
}
  0x1a   :  { %s315_s1 = scalar_lea.vmem %s19_s8, 128  ;;  %p320_p12 = scmp.lt.s32.totalorder %s19_s8, %s19_s8 }
  0x1b   :  { %p316_p11 = scmp.ne.s32.totalorder %s19_s8, %s315_s1  ;;  %p321_p13 = scmp.lt.s32.totalorder %s315_s1, %s315_s1 }
  0x1d   :  { %p322_p0 = por %p321_p13, %p320_p12 }
  0x1f   :  { %p323_p1 = pnand %p322_p0, %p316_p11 }
  0x21   :  { %326 = shalt.err (!%p323_p1)
}
  0x22   :  { %21 = dma.hbm_to_vmem [thread:$0]  %s442_s0, 128, %s19_s8, [#allocation3]  }
  0x23   :  { %s327_s22 = scalar_lea.hbm %s445_s3, 512 }
  0x24   :  { %p328_p2 = scmp.ne.s32.totalorder %s445_s3, %s327_s22  ;;  %p331_p3 = scmp.lt.u32.totalorder %s327_s22, %s445_s3 }
  0x26   :  { %p333_p4 = pnand %p331_p3, %p328_p2 }
  0x28   :  { %336 = shalt.err (!%p333_p4)
}
  0x29   :  { %s337_s27 = scalar_lea.vmem %s42_s10, 512  ;;  %p342_p6 = scmp.lt.s32.totalorder %s42_s10, %s42_s10 }
  0x2a   :  { %p338_p5 = scmp.ne.s32.totalorder %s42_s10, %s337_s27  ;;  %p343_p7 = scmp.lt.s32.totalorder %s337_s27, %s337_s27 }
  0x2c   :  { %p344_p8 = por %p343_p7, %p342_p6 }
  0x2e   :  { %p345_p9 = pnand %p344_p8, %p338_p5 }
  0x30   :  { %348 = shalt.err (!%p345_p9)
}
  0x31   :  { %47 = dma.hbm_to_vmem [thread:$0]  %s445_s3, 512, %s42_s10, [#allocation5], %s354_s28, %s354_s28, %s355_s29  }
  0x32   :  { %349 = dma.done.wait [#allocation3], 128  }
  0x33   :  { %350 = vsyncadd [#allocation3], 4294967168 }
  0x34   :  { %351 = dma.done.wait [#allocation5], 768  }
  0x35   :  { %352 = vsyncadd [#allocation5], 4294966528  ;;  %v358_v0 = vmov 0.0|0.0   ;;  %vm359_vm0 = vmmov 0   ;;  %v360_v1 = vmov 0.0   ;;  %v60_v2 = vld [vmem:[#allocation4] sm:$0xff] }
  0x36   :  { %266 = vmatprep.subr.bf16.mxu0 %v358_v0  ;;  %252 = vmatprep.mubr.msk.f32.mxu0 %vm359_vm0, %v360_v1  ;;  %v61_v3 = vld [vmem:[#allocation4 + $0x8] sm:$0xff]  ;;  %v144_v5 = vld [vmem:[#allocation6] sm:$0xff]  ;;  %v145_v6 = vld [vmem:[#allocation6 + $0x8] sm:$0xff]  ;;  %vm69_vm1 = vcmask 130048   ;;  %vm155_vm2 = vcmask 261120  }
  0x37   :  { %269 = vmatprep.subr.bf16.mxu1 %v358_v0  ;;  %263 = vmatprep.mubr.msk.f32.mxu1 %vm359_vm0, %v360_v1  ;;  %v267_v4 = vpack.c.bf16 %v61_v3, %v60_v2  ;;  %v270_v7 = vpack.c.bf16 %v145_v6, %v144_v5  ;;  %v59_v8 = vld [vmem:[#allocation2] sm:$0xff]  ;;  %v146_v9 = vld [vmem:[#allocation6 + $0x10] sm:$0xff]  ;;  %v147_v10 = vld [vmem:[#allocation6 + $0x18] sm:$0xff] }
  0x38   :  { %v273_v11 = vpack.c.bf16 %v147_v10, %v146_v9  ;;  %v236_v12 = vld [vmem:[%s444_s2] ss:$0 sm:$0xff] }
  0x39   :  { %268 = vmatpush3.bf16.msra.mxu0 %v267_v4  ;;  %271 = vmatpush3.bf16.msra.mxu1 %v270_v7  ;;  %v238_v17 = vld [vmem:[%s446_s4] ss:$0 sm:$0xff] }
  0x3a   :  { %272 = vmatprep.subr.bf16.mxu1 %v358_v0 }
  0x3c   :  { %253 = vmatmul.mubr.msk.f32.vlgmr.msra.gmra.mrb[0].mxu0 %vm69_vm1, %v59_v8 }
  0x3d   :  { %274 = vmatpush3.bf16.msra.mxu1 %v273_v11 }
 0x10f   :  { %v139_v13 = vpop.f32.mrb[0].mxu0 }
 0x110   :  { %v140_v14 = vadd.f32 %v236_v12, %v139_v13  ;;  %v254_v15 = vpop.f32.mrb[1].mxu0 }
 0x112   :  { %v143_v16 = vmax.f32 %v140_v14, 0.0 }
 0x114   :  { %264 = vmatmul.mubr.msk.f32.vlgmr.msra.gmra.mrb[0].mxu1 %vm155_vm2, %v143_v16 }
 0x1e7   :  { %v225_v18 = vpop.f32.mrb[0].mxu1 }
 0x1e8   :  { %v226_v19 = vadd.f32 %v238_v17, %v225_v18  ;;  %v265_v20 = vpop.f32.mrb[1].mxu1 }
 0x1ea   :  { %229 = vst [vmem:[%s447_s5] sm:$0xff] %v226_v19 }
 0x1eb   :  { %234 = vsyncpa [#allocation3], 1 }
 0x1ec   :  { %235 = vsyncpa [#allocation5], 1 }

</bundles_post_ra>
